<compile_context>
chip_gen: v7x
topology: tpu7x:2x2x1
jax: 0.10.0
libtpu: 0.0.40
codegen_flags: <defaults>
</compile_context>

<pallas_src>
import functools

import jax
import jax.numpy as jnp
from jax.experimental import pallas as pl
from jax.experimental.pallas import tpu as pltpu

EPS = 1e-5


def _ru(x, m):
    return (x + m - 1) // m * m


# ----------------------------- Pallas kernels ------------------------------ #
def _gn_silu_body(x, g_ref, b_ref, gm_ref, o_ref):
    """Shared GroupNorm+SiLU body on a (S, C) f32 tile (channels on the lane axis).

    g_ref : (1, C)  gamma,  b_ref: (1, C) beta
    gm_ref: (C, C)  group-averaging matrix: 1/(Cg*S) within a group, 0 elsewhere
    """
    s1 = jnp.sum(x, axis=0, keepdims=True)                                    # (1, C)
    mean = jnp.dot(s1, gm_ref[...], preferred_element_type=jnp.float32)       # group mean / chan
    d = x - mean
    s2 = jnp.sum(d * d, axis=0, keepdims=True)                                # mean-centered var
    var = jnp.dot(s2, gm_ref[...], preferred_element_type=jnp.float32)
    y = d * jax.lax.rsqrt(var + EPS)
    y = y * g_ref[...].astype(jnp.float32) + b_ref[...].astype(jnp.float32)
    o_ref[0] = (y * jax.nn.sigmoid(y)).astype(o_ref.dtype)                    # SiLU


def gn_silu_kernel(x_ref, g_ref, b_ref, gm_ref, o_ref):
    """GroupNorm + SiLU.  x_ref: (1, S, C)."""
    _gn_silu_body(x_ref[0].astype(jnp.float32), g_ref, b_ref, gm_ref, o_ref)


def gn_silu_bias_kernel(x_ref, cb_ref, g_ref, b_ref, gm_ref, o_ref):
    """GroupNorm + SiLU with a per-channel bias added BEFORE the statistics (time emb).

    x_ref: (1, S, C); cb_ref: (1, 1, C)
    """
    x = x_ref[0].astype(jnp.float32) + cb_ref[0].astype(jnp.float32)          # (S, C)
    _gn_silu_body(x, g_ref, b_ref, gm_ref, o_ref)


def conv3x3_kernel(x_ref, w_ref, b_ref, o_ref, *, H, W):
    """3x3 conv as 9 shifted matmuls accumulated in VMEM (fused im2col).

    x_ref: (1, H+2, W+2, Cin) zero-padded tile; w_ref: (9*Cin, Cout); b_ref: (1, Cout)
    """
    cin = x_ref.shape[-1]
    cout = o_ref.shape[-1]
    acc = jnp.zeros((H * W, cout), jnp.float32)
    for kk in range(9):                               # static unroll
        dh, dw = kk // 3, kk % 3
        xs = x_ref[0, dh:dh + H, dw:dw + W, :].reshape(H * W, cin)
        wk = w_ref[kk * cin:(kk + 1) * cin, :]
        acc = acc + jnp.dot(xs.astype(jnp.bfloat16), wk.astype(jnp.bfloat16),
                            preferred_element_type=jnp.float32)
    y = acc + b_ref[...].astype(jnp.float32)
    o_ref[0] = y.reshape(H, W, cout).astype(o_ref.dtype)


def conv3x3_res_kernel(x_ref, w_ref, b_ref, r_ref, o_ref, *, H, W):
    """Same as conv3x3_kernel, plus a fused residual add (r_ref: (1, H, W, Cout))."""
    cin = x_ref.shape[-1]
    cout = o_ref.shape[-1]
    acc = jnp.zeros((H * W, cout), jnp.float32)
    for kk in range(9):
        dh, dw = kk // 3, kk % 3
        xs = x_ref[0, dh:dh + H, dw:dw + W, :].reshape(H * W, cin)
        wk = w_ref[kk * cin:(kk + 1) * cin, :]
        acc = acc + jnp.dot(xs.astype(jnp.bfloat16), wk.astype(jnp.bfloat16),
                            preferred_element_type=jnp.float32)
    y = acc + b_ref[...].astype(jnp.float32) + r_ref[0].astype(jnp.float32).reshape(H * W, cout)
    o_ref[0] = y.reshape(H, W, cout).astype(o_ref.dtype)


def _mm_kernel(x_ref, w_ref, b_ref, o_ref, acc_ref, *, act_silu):
    """Tiled matmul: o = act(x) @ w + b   (bf16 MXU operands, f32 accumulation)."""
    @pl.when(pl.program_id(2) == 0)
    def _init():
        acc_ref[...] = jnp.zeros_like(acc_ref)

    x = x_ref[...].astype(jnp.float32)
    if act_silu:
        x = x * jax.nn.sigmoid(x)
    acc_ref[...] += jnp.dot(x.astype(jnp.bfloat16), w_ref[...].astype(jnp.bfloat16),
                            preferred_element_type=jnp.float32)

    @pl.when(pl.program_id(2) == pl.num_programs(2) - 1)
    def _fin():
        o_ref[...] = (acc_ref[...] + b_ref[...].astype(jnp.float32)).astype(o_ref.dtype)


def _mm_res_kernel(x_ref, w_ref, b_ref, r_ref, o_ref, acc_ref):
    """Tiled matmul with fused residual add: o = x @ w + b + r."""
    @pl.when(pl.program_id(2) == 0)
    def _init():
        acc_ref[...] = jnp.zeros_like(acc_ref)

    acc_ref[...] += jnp.dot(x_ref[...].astype(jnp.bfloat16), w_ref[...].astype(jnp.bfloat16),
                            preferred_element_type=jnp.float32)

    @pl.when(pl.program_id(2) == pl.num_programs(2) - 1)
    def _fin():
        o_ref[...] = (acc_ref[...] + b_ref[...].astype(jnp.float32)
                      + r_ref[...].astype(jnp.float32)).astype(o_ref.dtype)


def flash_attn_kernel(q_ref, k_ref, v_ref, o_ref, m_sc, l_sc, acc_sc, *, scale):
    """Single-head online-softmax attention; grid = (batch, kv-tiles)."""
    kv = pl.program_id(1)

    @pl.when(kv == 0)
    def _init():
        m_sc[...] = jnp.full_like(m_sc, -jnp.inf)
        l_sc[...] = jnp.zeros_like(l_sc)
        acc_sc[...] = jnp.zeros_like(acc_sc)

    q = q_ref[0].astype(jnp.bfloat16)
    k = k_ref[0].astype(jnp.bfloat16)
    s = jax.lax.dot_general(q, k, (((1,), (1,)), ((), ())),
                            preferred_element_type=jnp.float32) * scale      # (S, tkv) f32
    m_new = jnp.maximum(m_sc[...], jnp.max(s, axis=-1, keepdims=True))
    alpha = jnp.exp(m_sc[...] - m_new)
    p = jnp.exp(s - m_new)
    l_sc[...] = alpha * l_sc[...] + jnp.sum(p, axis=-1, keepdims=True)
    acc_sc[...] = alpha * acc_sc[...] + jnp.dot(p.astype(jnp.bfloat16),
                                                v_ref[0].astype(jnp.bfloat16),
                                                preferred_element_type=jnp.float32)
    m_sc[...] = m_new

    @pl.when(kv == pl.num_programs(1) - 1)
    def _fin():
        o_ref[0] = (acc_sc[...] * pl.reciprocal(l_sc[...], approx=True)).astype(o_ref.dtype)


# ----------------------------- Pallas wrappers ------------------------------ #
def gn_silu(x_bsc, gamma, beta, n_groups, cbias_b1c=None):
    """x_bsc: (B, HW, C); optional cbias_b1c: (B, 1, C) added per channel before GN stats."""
    B, S, C = x_bsc.shape
    Cg = C // n_groups
    ids = jnp.arange(C) // Cg
    gm = (ids[:, None] == ids[None, :]).astype(jnp.float32) / float(Cg * S)   # (C, C)
    x_spec = pl.BlockSpec((1, S, C), lambda b: (b, 0, 0))
    const_specs = [
        pl.BlockSpec((1, C), lambda b: (0, 0)),
        pl.BlockSpec((1, C), lambda b: (0, 0)),
        pl.BlockSpec((C, C), lambda b: (0, 0)),
    ]
    o_spec = pl.BlockSpec((1, S, C), lambda b: (b, 0, 0))
    cparams = pltpu.CompilerParams(dimension_semantics=("parallel",))
    args = (gamma.reshape(1, C), beta.reshape(1, C), gm)
    if cbias_b1c is None:
        return pl.pallas_call(
            gn_silu_kernel,
            out_shape=jax.ShapeDtypeStruct((B, S, C), x_bsc.dtype),
            grid=(B,),
            in_specs=[x_spec] + const_specs,
            out_specs=o_spec, compiler_params=cparams,
        )(x_bsc, *args)
    cb_spec = pl.BlockSpec((1, 1, C), lambda b: (b, 0, 0))
    return pl.pallas_call(
        gn_silu_bias_kernel,
        out_shape=jax.ShapeDtypeStruct((B, S, C), x_bsc.dtype),
        grid=(B,),
        in_specs=[x_spec, cb_spec] + const_specs,
        out_specs=o_spec, compiler_params=cparams,
    )(x_bsc, cbias_b1c, *args)


def conv3x3(x_nhwc, w, b, res_nhwc=None):
    """3x3 same-pad conv.  x: (B,H,W,Cin), w: (9*Cin, Cout) with rows ordered (dh,dw,cin)."""
    B, H, W, Cin = x_nhwc.shape
    Cout = w.shape[-1]
    xp = jnp.pad(x_nhwc, ((0, 0), (1, 1), (1, 1), (0, 0)))                    # halo pad only
    x_spec = pl.BlockSpec((1, H + 2, W + 2, Cin), lambda bb: (bb, 0, 0, 0))
    w_spec = pl.BlockSpec((9 * Cin, Cout), lambda bb: (0, 0))
    b_spec = pl.BlockSpec((1, Cout), lambda bb: (0, 0))
    o_spec = pl.BlockSpec((1, H, W, Cout), lambda bb: (bb, 0, 0, 0))
    cparams = pltpu.CompilerParams(dimension_semantics=("parallel",))
    if res_nhwc is None:
        return pl.pallas_call(
            functools.partial(conv3x3_kernel, H=H, W=W),
            out_shape=jax.ShapeDtypeStruct((B, H, W, Cout), x_nhwc.dtype),
            grid=(B,), in_specs=[x_spec, w_spec, b_spec], out_specs=o_spec,
            compiler_params=cparams,
        )(xp, w, b.reshape(1, Cout))
    r_spec = pl.BlockSpec((1, H, W, Cout), lambda bb: (bb, 0, 0, 0))
    return pl.pallas_call(
        functools.partial(conv3x3_res_kernel, H=H, W=W),
        out_shape=jax.ShapeDtypeStruct((B, H, W, Cout), x_nhwc.dtype),
        grid=(B,), in_specs=[x_spec, w_spec, b_spec, r_spec], out_specs=o_spec,
        compiler_params=cparams,
    )(xp, w, b.reshape(1, Cout), res_nhwc)


def matmul_bias(x, w, b, res=None, act_silu=False, tm=128, tn=128, tk=128):
    """Tiled/pipelined matmul (+bias, optional input-SiLU, optional residual add).

    Pads M/K/N up to tile multiples (lane-dense outputs) and slices the result back.
    Production: sweep (tm, tn, tk) toward (512, 256, 512); shown defaults fit toy shapes.
    """
    M, K = x.shape
    _, N = w.shape
    tm = min(tm, _ru(M, 8))
    tn = min(tn, _ru(N, 128))
    tk = min(tk, _ru(K, 128))
    Mp, Kp, Np = _ru(M, tm), _ru(K, tk), _ru(N, tn)
    xp = x if (Mp, Kp) == (M, K) else jnp.pad(x, ((0, Mp - M), (0, Kp - K)))
    wp = w if (Kp, Np) == (K, N) else jnp.pad(w, ((0, Kp - K), (0, Np - N)))
    bp = b.reshape(1, N)
    if Np != N:
        bp = jnp.pad(bp, ((0, 0), (0, Np - N)))

    grid = (Mp // tm, Np // tn, Kp // tk)
    x_spec = pl.BlockSpec((tm, tk), lambda i, j, kk: (i, kk))
    w_spec = pl.BlockSpec((tk, tn), lambda i, j, kk: (kk, j))
    b_spec = pl.BlockSpec((1, tn), lambda i, j, kk: (0, j))
    o_spec = pl.BlockSpec((tm, tn), lambda i, j, kk: (i, j))
    cparams = pltpu.CompilerParams(
        dimension_semantics=("parallel", "parallel", "arbitrary"))
    scratch = [pltpu.VMEM((tm, tn), jnp.float32)]

    if res is None:
        out = pl.pallas_call(
            functools.partial(_mm_kernel, act_silu=act_silu),
            out_shape=jax.ShapeDtypeStruct((Mp, Np), x.dtype),
            grid=grid, in_specs=[x_spec, w_spec, b_spec], out_specs=o_spec,
            scratch_shapes=scratch, compiler_params=cparams,
        )(xp, wp, bp)
    else:
        rp = res if (Mp, Np) == res.shape else jnp.pad(res, ((0, Mp - M), (0, Np - N)))
        r_spec = pl.BlockSpec((tm, tn), lambda i, j, kk: (i, j))
        out = pl.pallas_call(
            _mm_res_kernel,
            out_shape=jax.ShapeDtypeStruct((Mp, Np), x.dtype),
            grid=grid, in_specs=[x_spec, w_spec, b_spec, r_spec], out_specs=o_spec,
            scratch_shapes=scratch, compiler_params=cparams,
        )(xp, wp, bp, rp)

    if (Mp, Np) != (M, N):
        out = out[:M, :N]
    return out


def attention(q, k, v, scale, tkv=128):
    """Flash-style single-head attention over (B, S, D)."""
    B, S, D = q.shape
    tkv = min(tkv, S)
    assert S % tkv == 0  # TODO(synk): mask ragged KV tiles when S is not a tile multiple
    nkv = S // tkv
    return pl.pallas_call(
        functools.partial(flash_attn_kernel, scale=scale),
        out_shape=jax.ShapeDtypeStruct((B, S, D), q.dtype),
        grid=(B, nkv),
        in_specs=[
            pl.BlockSpec((1, S, D), lambda b, kv: (b, 0, 0)),
            pl.BlockSpec((1, tkv, D), lambda b, kv: (b, kv, 0)),
            pl.BlockSpec((1, tkv, D), lambda b, kv: (b, kv, 0)),
        ],
        out_specs=pl.BlockSpec((1, S, D), lambda b, kv: (b, 0, 0)),
        scratch_shapes=[pltpu.VMEM((S, 1), jnp.float32),
                        pltpu.VMEM((S, 1), jnp.float32),
                        pltpu.VMEM((S, D), jnp.float32)],
        compiler_params=pltpu.CompilerParams(
            dimension_semantics=("parallel", "arbitrary")),
    )(q, k, v)


# ------------------------------- forward ------------------------------------ #
def upblock_forward(params, x_nchw, t, *, n_groups=32, has_attn=True):
    """UpBlock.forward: x already holds the concatenated (prev + skip) channels."""
    B, Cin, H, W = x_nchw.shape
    Cout = params["conv1_w"].shape[-1]
    HW = H * W

    # module boundary: NCHW -> (B, HW, C) rows (one transpose in, one out; none internally)
    x_nhwc = jnp.transpose(x_nchw, (0, 2, 3, 1))                                  # (B,H,W,Cin)
    x_rows = x_nhwc.reshape(B, HW, Cin)

    # ---- ResBlock ----
    h = gn_silu(x_rows, params["gn1_g"], params["gn1_b"], n_groups)               # (B,HW,Cin)
    h = conv3x3(h.reshape(B, H, W, Cin), params["conv1_w"], params["conv1_b"])    # (B,H,W,Cout)

    tb = matmul_bias(t, params["time_w"], params["time_b"], act_silu=True)        # (B, Cout)

    # time bias is added before GroupNorm2 (enters the stats) -> fused into the GN kernel
    h2 = gn_silu(h.reshape(B, HW, Cout), params["gn2_g"], params["gn2_b"], n_groups,
                 cbias_b1c=tb.reshape(B, 1, Cout))                                # (B,HW,Cout)
    # Dropout(0.1): identity at inference  # TODO(synk): training-mode dropout

    if "resc_w" in params:                                                        # 1x1 res conv
        res_rows = matmul_bias(x_rows.reshape(B * HW, Cin),
                               params["resc_w"], params["resc_b"])                # (B*HW, Cout)
    else:                                                                         # Identity
        res_rows = x_rows.reshape(B * HW, Cin)
    h3 = conv3x3(h2.reshape(B, H, W, Cout), params["conv2_w"], params["conv2_b"],
                 res_nhwc=res_rows.reshape(B, H, W, Cout))                        # (B,H,W,Cout)

    # ---- AttentionBlock (n_heads=1, d_k=Cout; torch forward never applies self.norm) ----
    if has_attn:
        h3_rows = h3.reshape(B * HW, Cout)
        # fused QKV projection: one pallas_call, x read from HBM once
        qkv = matmul_bias(h3_rows, params["attn_proj_w"],
                          params["attn_proj_b"]).reshape(B, HW, 3 * Cout)
        q = qkv[:, :, :Cout]
        k = qkv[:, :, Cout:2 * Cout]
        v = qkv[:, :, 2 * Cout:]
        attn_out = attention(q, k, v, float(Cout) ** -0.5)                        # (B, HW, Cout)
        out_rows = matmul_bias(attn_out.reshape(B * HW, Cout),
                               params["attn_out_w"], params["attn_out_b"],
                               res=h3_rows)                                       # fused +x
        out = out_rows.reshape(B, H, W, Cout)
    else:
        out = h3

    return jnp.transpose(out, (0, 3, 1, 2))                                       # NCHW


# --------------------------- pure-JAX reference ------------------------------ #
def ref_forward(params, x, t, *, n_groups=32, has_attn=True):
    def gnorm(xc, g, b):
        B, C, H, W = xc.shape
        xg = xc.reshape(B, n_groups, -1)
        m = xg.mean(-1, keepdims=True)
        v = xg.var(-1, keepdims=True)
        xn = ((xg - m) / jnp.sqrt(v + EPS)).reshape(B, C, H, W)
        return xn * g[None, :, None, None] + b[None, :, None, None]

    def silu(z):
        return z * jax.nn.sigmoid(z)

    def conv3(xc, w_flat, b):
        Cin = xc.shape[1]
        w = w_flat.reshape(3, 3, Cin, -1).transpose(3, 2, 0, 1)  # OIHW
        y = jax.lax.conv_general_dilated(xc, w, (1, 1), ((1, 1), (1, 1)),
                                         dimension_numbers=("NCHW", "OIHW", "NCHW"))
        return y + b[None, :, None, None]

    h = conv3(silu(gnorm(x, params["gn1_g"], params["gn1_b"])), params["conv1_w"], params["conv1_b"])
    tb = silu(t) @ params["time_w"] + params["time_b"]
    h = h + tb[:, :, None, None]
    h = conv3(silu(gnorm(h, params["gn2_g"], params["gn2_b"])), params["conv2_w"], params["conv2_b"])
    if "resc_w" in params:
        res = jnp.einsum("bchw,cd->bdhw", x, params["resc_w"]) + params["resc_b"][None, :, None, None]
    else:
        res = x
    h = h + res
    if not has_attn:
        return h
    B, C, H, W = h.shape
    xr = h.reshape(B, C, H * W).transpose(0, 2, 1)
    qkv = xr @ params["attn_proj_w"] + params["attn_proj_b"]
    q, k, v = jnp.split(qkv, 3, axis=-1)
    attn = jnp.einsum("bid,bjd->bij", q, k) * (float(C) ** -0.5)
    attn = jax.nn.softmax(attn, axis=-1)
    o = jnp.einsum("bij,bjd->bid", attn, v)
    o = o @ params["attn_out_w"] + params["attn_out_b"] + xr
    return o.transpose(0, 2, 1).reshape(B, C, H, W)


# --------------------------------- main -------------------------------------- #
def init_params(in_ch, out_ch, time_ch):
    keys = jax.random.split(jax.random.PRNGKey(1), 16)

    def nrm(k, shape, s=0.05):
        return (jax.random.normal(k, shape) * s).astype(jnp.float32)

    p = {
        "gn1_g": jnp.ones((in_ch,), jnp.float32) + nrm(keys[0], (in_ch,), 0.1),
        "gn1_b": nrm(keys[1], (in_ch,), 0.1),
        "conv1_w": nrm(keys[2], (9 * in_ch, out_ch)),
        "conv1_b": nrm(keys[3], (out_ch,)),
        "time_w": nrm(keys[4], (time_ch, out_ch)),
        "time_b": nrm(keys[5], (out_ch,)),
        "gn2_g": jnp.ones((out_ch,), jnp.float32) + nrm(keys[6], (out_ch,), 0.1),
        "gn2_b": nrm(keys[7], (out_ch,), 0.1),
        "conv2_w": nrm(keys[8], (9 * out_ch, out_ch)),
        "conv2_b": nrm(keys[9], (out_ch,)),
        "attn_proj_w": nrm(keys[12], (out_ch, 3 * out_ch)),
        "attn_proj_b": nrm(keys[13], (3 * out_ch,)),
        "attn_out_w": nrm(keys[14], (out_ch, out_ch)),
        "attn_out_b": nrm(keys[15], (out_ch,)),
    }
    if in_ch != out_ch:  # otherwise res_conv is nn.Identity
        p["resc_w"] = nrm(keys[10], (in_ch, out_ch))
        p["resc_b"] = nrm(keys[11], (out_ch,))
    return p


if __name__ == "__main__":
    # UpBlock(prev_ch=32, cat_ch=32, out_ch=128, time_ch=32, has_attn=True); n_groups=32
    B, PREV_CH, CAT_CH, OUT_CH, TIME_CH, H, W = 2, 32, 32, 128, 32, 8, 8
    IN_CH = PREV_CH + CAT_CH  # UpBlock receives the already-concatenated (prev, skip) tensor

    kp, ks, kt = jax.random.split(jax.random.PRNGKey(0), 3)
    x_prev = jax.random.normal(kp, (B, PREV_CH, H, W), jnp.float32)
    x_skip = jax.random.normal(ks, (B, CAT_CH, H, W), jnp.float32)
    x = jnp.concatenate([x_prev, x_skip], axis=1)                 # (B, IN_CH, H, W)
    t = jax.random.normal(kt, (B, TIME_CH), jnp.float32)
    params = init_params(IN_CH, OUT_CH, TIME_CH)

    out = upblock_forward(params, x, t, n_groups=32, has_attn=True)
    out = jax.block_until_ready(out)
    assert out.shape == (B, OUT_CH, H, W), out.shape

    ref = jax.block_until_ready(ref_forward(params, x, t, n_groups=32, has_attn=True))
    assert bool(jnp.all(jnp.isfinite(out)))
    # bf16 MXU operands (f32 accumulation) -> slightly looser elementwise tolerance,
    # plus a tight global relative-L2 check.
    max_err = float(jnp.max(jnp.abs(out - ref)))
    rel_l2 = float(jnp.linalg.norm(out - ref) / jnp.linalg.norm(ref))
    assert bool(jnp.allclose(out, ref, atol=4e-2, rtol=4e-2)), max_err
    assert rel_l2 < 2e-2, rel_l2

    print("KERNEL_OK")
</pallas_src>

<mosaic_0001>
module attributes {stable_mosaic.version = 11 : i64} {
  func.func @gn_silu_kernel(%arg0: i32, %arg1: memref<1x64x64xf32, #tpu.memory_space<vmem>>, %arg2: memref<1x64xf32, #tpu.memory_space<vmem>>, %arg3: memref<1x64xf32, #tpu.memory_space<vmem>>, %arg4: memref<64x64xf32, #tpu.memory_space<vmem>>, %arg5: memref<1x64x64xf32, #tpu.memory_space<vmem>>) attributes {dimension_semantics = [#tpu.dimension_semantics<parallel>], iteration_bounds = array<i64: 2>, scalar_prefetch = 0 : i64, scratch_operands = 0 : i64, tpu.core_type = #tpu.core_type<tc>, window_params = [{transform_indices = @transform_0, window_bounds = array<i64: 1, 64, 64>}, {pipeline_mode = #tpu.pipeline_mode<synchronous>, transform_indices = @transform_1, window_bounds = array<i64: 1, 64>}, {pipeline_mode = #tpu.pipeline_mode<synchronous>, transform_indices = @transform_2, window_bounds = array<i64: 1, 64>}, {pipeline_mode = #tpu.pipeline_mode<synchronous>, transform_indices = @transform_3, window_bounds = array<i64: 64, 64>}, {transform_indices = @transform_4, window_bounds = array<i64: 1, 64, 64>}]} {
    %c0 = arith.constant 0 : index
    %c0_0 = arith.constant 0 : index
    %c0_1 = arith.constant 0 : index
    %0 = vector.load %arg1[%c0, %c0_0, %c0_1] : memref<1x64x64xf32, #tpu.memory_space<vmem>>, vector<1x64x64xf32>
    %1 = vector.shape_cast %0 : vector<1x64x64xf32> to vector<64x64xf32>
    %cst = arith.constant dense<0.000000e+00> : vector<64xf32>
    %2 = vector.multi_reduction <add>, %1, %cst [0] : vector<64x64xf32> to vector<64xf32>
    %3 = vector.shape_cast %2 : vector<64xf32> to vector<1x64xf32>
    %c0_2 = arith.constant 0 : index
    %c0_3 = arith.constant 0 : index
    %4 = vector.load %arg4[%c0_2, %c0_3] : memref<64x64xf32, #tpu.memory_space<vmem>>, vector<64x64xf32>
    %cst_4 = arith.constant dense<0.000000e+00> : vector<1x64xf32>
    %5 = tpu.matmul %3, %4, %cst_4 {dimension_numbers = #tpu.dot_dimension_numbers<[1], [0], [0], [1], [0, 0, 1, 1], [], []>} : vector<1x64xf32>, vector<64x64xf32>, vector<1x64xf32> -> vector<1x64xf32>
    %6 = vector.broadcast %5 : vector<1x64xf32> to vector<64x64xf32>
    %7 = arith.subf %1, %6 : vector<64x64xf32>
    %8 = arith.mulf %7, %7 : vector<64x64xf32>
    %cst_5 = arith.constant dense<0.000000e+00> : vector<64xf32>
    %9 = vector.multi_reduction <add>, %8, %cst_5 [0] : vector<64x64xf32> to vector<64xf32>
    %10 = vector.shape_cast %9 : vector<64xf32> to vector<1x64xf32>
    %c0_6 = arith.constant 0 : index
    %c0_7 = arith.constant 0 : index
    %11 = vector.load %arg4[%c0_6, %c0_7] : memref<64x64xf32, #tpu.memory_space<vmem>>, vector<64x64xf32>
    %cst_8 = arith.constant dense<0.000000e+00> : vector<1x64xf32>
    %12 = tpu.matmul %10, %11, %cst_8 {dimension_numbers = #tpu.dot_dimension_numbers<[1], [0], [0], [1], [0, 0, 1, 1], [], []>} : vector<1x64xf32>, vector<64x64xf32>, vector<1x64xf32> -> vector<1x64xf32>
    %cst_9 = arith.constant 9.99999974E-6 : f32
    %13 = vector.broadcast %cst_9 : f32 to vector<1x64xf32>
    %14 = arith.addf %12, %13 : vector<1x64xf32>
    %15 = math.rsqrt %14 : vector<1x64xf32>
    %16 = vector.broadcast %15 : vector<1x64xf32> to vector<64x64xf32>
    %17 = arith.mulf %7, %16 : vector<64x64xf32>
    %c0_10 = arith.constant 0 : index
    %c0_11 = arith.constant 0 : index
    %18 = vector.load %arg2[%c0_10, %c0_11] : memref<1x64xf32, #tpu.memory_space<vmem>>, vector<1x64xf32>
    %19 = vector.broadcast %18 : vector<1x64xf32> to vector<64x64xf32>
    %20 = arith.mulf %17, %19 : vector<64x64xf32>
    %c0_12 = arith.constant 0 : index
    %c0_13 = arith.constant 0 : index
    %21 = vector.load %arg3[%c0_12, %c0_13] : memref<1x64xf32, #tpu.memory_space<vmem>>, vector<1x64xf32>
    %22 = vector.broadcast %21 : vector<1x64xf32> to vector<64x64xf32>
    %23 = arith.addf %20, %22 : vector<64x64xf32>
    %24 = arith.negf %23 : vector<64x64xf32>
    %25 = math.exp %24 : vector<64x64xf32>
    %cst_14 = arith.constant 1.000000e+00 : f32
    %26 = vector.broadcast %cst_14 : f32 to vector<64x64xf32>
    %27 = arith.addf %26, %25 : vector<64x64xf32>
    %28 = arith.divf %26, %27 : vector<64x64xf32>
    %29 = arith.mulf %23, %28 : vector<64x64xf32>
    %c0_15 = arith.constant 0 : index
    %c0_16 = arith.constant 0 : index
    %c0_17 = arith.constant 0 : index
    %30 = vector.load %arg5[%c0_15, %c0_16, %c0_17] : memref<1x64x64xf32, #tpu.memory_space<vmem>>, vector<1x64x64xf32>
    %31 = vector.shape_cast %30 : vector<1x64x64xf32> to vector<64x64xf32>
    %32 = vector.shape_cast %29 : vector<64x64xf32> to vector<1x64x64xf32>
    tpu.vector_store %arg5[%c0_15, %c0_16, %c0_17], %32 {strides = array<i32>} : memref<1x64x64xf32, #tpu.memory_space<vmem>>, vector<1x64x64xf32>,
    return
  }
  func.func @transform_0(%arg0: i32) -> (i32, i32, i32) {
    %c0_i32 = arith.constant 0 : i32
    %c0_i32_0 = arith.constant 0 : i32
    %c0_i32_1 = arith.constant 0 : i32
    return %arg0, %c0_i32, %c0_i32_0 : i32, i32, i32
  }
  func.func @transform_1(%arg0: i32) -> (i32, i32) {
    %c0_i32 = arith.constant 0 : i32
    %c0_i32_0 = arith.constant 0 : i32
    %c0_i32_1 = arith.constant 0 : i32
    return %c0_i32, %c0_i32_0 : i32, i32
  }
  func.func @transform_2(%arg0: i32) -> (i32, i32) {
    %c0_i32 = arith.constant 0 : i32
    %c0_i32_0 = arith.constant 0 : i32
    %c0_i32_1 = arith.constant 0 : i32
    return %c0_i32, %c0_i32_0 : i32, i32
  }
  func.func @transform_3(%arg0: i32) -> (i32, i32) {
    %c0_i32 = arith.constant 0 : i32
    %c0_i32_0 = arith.constant 0 : i32
    %c0_i32_1 = arith.constant 0 : i32
    return %c0_i32, %c0_i32_0 : i32, i32
  }
  func.func @transform_4(%arg0: i32) -> (i32, i32, i32) {
    %c0_i32 = arith.constant 0 : i32
    %c0_i32_0 = arith.constant 0 : i32
    %c0_i32_1 = arith.constant 0 : i32
    return %arg0, %c0_i32, %c0_i32_0 : i32, i32, i32
  }
}

</mosaic_0001>

<bundles_post_ra>
// kernel: tpu_custom_call.1
= control target key start
LH: loop header
LB: loop body
LE: loop exit
PB: predicated region body
PF: predicated region fallthrough
CT: control target
= control target key end

     0   :  { %9 = vsyncpa [#allocation3], 0  ;;  %s1294_s0 = inlined_call_operand.hbm [shape: f32[2,64,64], index: 0, kind: input, shape index: {}]   ;;  %s1295_s1 = inlined_call_operand.vmem [shape: f32[1,64], index: 1, kind: input, shape index: {}]   ;;  %s1296_s2 = inlined_call_operand.vmem [shape: f32[1,64], index: 2, kind: input, shape index: {}]   ;;  %s1297_s3 = inlined_call_operand.hbm [shape: f32[64,64], index: 3, kind: input, shape index: {}]   ;;  %s1298_s4 = inlined_call_operand.hbm [shape: f32[2,64,64], index: 4, kind: output, shape index: {}]  }
   0x1   :  { %11 = vsyncpa [#allocation3 + $0x1], 0 }
   0x2   :  { %12 = vsyncpa [#allocation6], 0 }
   0x3   :  { %13 = vsyncpa [#allocation4], 0 }
   0x4   :  { %15 = vsyncpa [#allocation4 + $0x1], 0  ;;  %s1033_s15 = smov 0   ;;  %s1035_s16 = smov 0  }
   0x5   :  { %s1037_s17 = smov 0   ;;  %s1039_s18 = smov 0  }
   0x6 LB: > { %s1054_s19 = sadd.s32 4294967295, %s996_s18   ;;  %s660_s20 = sadd.s32 4294967294, %s996_s18   ;;  %s996_s18 = sphi %s1039_s18, %s1318_s18   ;;  %s992_s17 = sphi %s1037_s17, %s1317_s17   ;;  %s988_s16 = sphi %s1035_s16, %s1316_s16   ;;  %s984_s15 = sphi %s1033_s15, %s1315_s15  }
   0x7   : > { %p41_p0 = scmp.ne.s32.totalorder %s988_s16, %s984_s15  ;;  %p1299_p1 = scmp.eq.s32.totalorder %s1054_s19, 0 }
   0x8   : > { %p134_p3 = scmp.eq.s32.totalorder %s660_s20, 1  ;;  %p661_p5 = scmp.ge.s32.totalorder %s996_s18, 1 }
   0x9   : > { %p1063_p4 = por %p1299_p1, %p41_p0  ;;  %p141_p7 = scmp.lt.s32.totalorder %s996_s18, 3 }
   0xa   : > { %p1068_p6 = por %p134_p3, %p41_p0  ;;  %s998_s24 = smov [#allocation5]  }
   0xb   : > { %s1302_s21 = scalar_select %p1063_p4, 1, 0 }
   0xc   : > { %s1303_s22 = scalar_select %p1068_p6, 1, 0 }
   0xd   : > { %p1073_p8 = pnand %p661_p5, %p141_p7  ;;  %s159_s25 = sshll.u32 %s998_s24, 4  ;;  %s1077_s25 = int_to_ptr.vmem [resolvable:$true] %s159_s25 }
   0xe   : > { %s1089_s27 = sadd.s32 1, %s996_s18   ;;  %s28_s28 = sadd.s32 1, %s992_s17 }
   0xf   : > { %s1304_s23 = scalar_select %p1073_p8, 1, 0 }
  0x10   : > { %p778_p9 = pneg %p1073_p8  ;;  %s25_s29 = ssub.s32 %s996_s18, %s1089_s27 }
  0x11   : > { %s868_s6 = scalar_lea.hbm %s1297_s3, 1024 }
  0x12   : > { %p1084_p11 = pnand %p778_p9, %p1299_p1  ;;  %p869_p12 = scmp.ne.s32.totalorder %s1297_s3, %s868_s6 }
  0x13   : > { %p875_p5 = scmp.lt.u32.totalorder %s868_s6, %s1297_s3 }
  0x14   : > { %p870_p13 = pneg %p1084_p11 }
  0x16   : > { %p871_p0 = pnand %p870_p13, %p869_p12 }
  0x18   : > { %p872_p3 = pneg %p871_p0 }
  0x1a   : > { %p877_p7 = pnand %p875_p5, %p872_p3 }
  0x1c   : > { %880 = shalt.err (!%p877_p7)
}
  0x1d   : > { %s881_s11 = scalar_lea.vmem %s1077_s25, 1024  ;;  %p889_p2 = scmp.lt.s32.totalorder %s1077_s25, %s1077_s25 }
  0x1e   : > { %p882_p9 = scmp.ne.s32.totalorder %s1077_s25, %s881_s11  ;;  %p890_p6 = scmp.lt.s32.totalorder %s881_s11, %s881_s11 }
  0x20   : > { %p884_p10 = pnand %p882_p9, %p870_p13  ;;  %p891_p4 = por %p890_p6, %p889_p2 }
  0x22   : > { %p885_p1 = pneg %p884_p10 }
  0x24   : > { %p892_p8 = pnand %p891_p4, %p885_p1 }
  0x26   : > { %895 = shalt.err (!%p892_p8)
}
  0x27   : > { %s999_s12 = smov 128   ;;  %s1000_s13 = smov 8  }
  0x28   : > { %781 = dma.hbm_to_vmem [thread:$0]  (!%p1084_p11), %s1297_s3, 1024, %s1077_s25, [#allocation6], %s999_s12, %s999_s12, %s1000_s13  }
  0x29   : > { %p26_p1 = scmp.eq.s32.totalorder %s25_s29, 0  ;;  %p35_p2 = scmp.ne.s32.totalorder %s992_s17, %s988_s16 }
  0x2a   : > { %p36_p4 = scmp.eq.s32.totalorder %s996_s18, 0  ;;  %p791_p6 = scmp.lt.s32.totalorder %s996_s18, 2 }
  0x2b   : > { %s1123_s24 = scalar_select %p26_p1, %s992_s17, %s28_s28  }
  0x2c   : > { %p37_p8 = por %p36_p4, %p35_p2  ;;  %p1306_p10 = scmp.eq.s32.totalorder %s1054_s19, 1 }
  0x2d   : > { %s173_s26 = sand.u32 1, %s992_s17   ;;  %s688_s5 = sshll.u32 %s996_s18, 10 }
  0x2e   : > { %p1127_p12 = por %p1306_p10, %p35_p2  ;;  %s664_s6 = sshll.u32 %s173_s26, 6 }
  0x2f   : > { %s1136_s9 = scalar_lea.hbm %s1294_s0, %s688_s5  ;;  %s177_s25 = scalar_lea.vmem [#allocation2], %s664_s6 }
  0x30   : > { %s184_s28 = sshll.u32 %s177_s25, 4  ;;  %p1138_p11 = pnand %p791_p6, %p37_p8  ;;  %s1142_s28 = int_to_ptr.vmem [resolvable:$true] %s184_s28 }
  0x31   : > { %s1144_s10 = scalar_lea.sflag [#allocation3], %s173_s26  ;;  %s896_s11 = scalar_lea.hbm %s1136_s9, 1024 }
  0x32   : > { %p897_p13 = scmp.ne.s32.totalorder %s1136_s9, %s896_s11  ;;  %p898_p0 = pneg %p1138_p11 }
  0x33   : > { %s901_s5 = scalar_lea.hbm %s1294_s0, 2048  ;;  %p902_p7 = scmp.lt.u32.totalorder %s1136_s9, %s1294_s0 }
  0x34   : > { %p899_p3 = pnand %p898_p0, %p897_p13  ;;  %p903_p9 = scmp.lt.u32.totalorder %s901_s5, %s896_s11 }
  0x35   : > { %p905_p2 = scmp.lt.u32.totalorder %s896_s11, %s1136_s9 }
  0x36   : > { %p900_p5 = pneg %p899_p3  ;;  %p904_p1 = por %p903_p9, %p902_p7 }
  0x38   : > { %p906_p4 = por %p905_p2, %p904_p1 }
  0x3a   : > { %p907_p6 = pnand %p906_p4, %p900_p5 }
  0x3c   : > { %910 = shalt.err (!%p907_p6)
}
  0x3d   : > { %s911_s26 = scalar_lea.vmem %s1142_s28, 1024  ;;  %s1001_s8 = smov [#allocation2]  }
  0x3e   : > { %p912_p8 = scmp.ne.s32.totalorder %s1142_s28, %s911_s26  ;;  %s916_s25 = sshll.u32 %s1001_s8, 4  ;;  %s917_s25 = int_to_ptr.vmem [resolvable:$false] %s916_s25 }
  0x3f   : > { %s918_s14 = scalar_lea.vmem %s917_s25, 2048  ;;  %p919_p3 = scmp.lt.s32.totalorder %s1142_s28, %s917_s25 }
  0x40   : > { %p914_p10 = pnand %p912_p8, %p898_p0  ;;  %p920_p7 = scmp.lt.s32.totalorder %s918_s14, %s911_s26 }
  0x42   : > { %p915_p13 = pneg %p914_p10  ;;  %p921_p9 = por %p920_p7, %p919_p3 }
  0x44   : > { %p922_p1 = pnand %p921_p9, %p915_p13 }
  0x46   : > { %925 = shalt.err (!%p922_p1)
}
  0x47   : > { %785 = dma.hbm_to_vmem [thread:$0]  (!%p1138_p11), %s1136_s9, 1024, %s1142_s28, %s1144_s10, %s999_s12, %s999_s12, %s1000_s13  }
  0x48   : > { %p1309_p0 = scmp.ne.s32.totalorder %s1304_s23, 0 }
  0x49   : > { %s1178_s11 = sand.u32 (!%p1309_p0), 1, %s988_s16   ;;  %p1310_p5 = scmp.ne.s32.totalorder (!%p1309_p0), %s1302_s21, 0 }
  0x4a   : > { %196 = sbr.rel (%p1309_p0) target bundleno = 643 (0x283), region = 36  ;;  %s668_s20 = sshll.u32 (!%p1309_p0), %s1178_s11, 6 }
  0x4b   : > { %s199_s5 = scalar_lea.sflag (!%p1309_p0), [#allocation3], %s1178_s11  ;;  %s1184_s29 = scalar_lea.vmem (!%p1309_p0), [#allocation2], %s668_s20 }
  0x51   : > { %971 = dma.done.wait (%p1310_p5), %s199_s5, 1024  }
  0x52   : > { %973 = vsyncadd (%p1310_p5), %s199_s5, 4294966272  ;;  %p1311_p11 = scmp.eq.s32.totalorder %s1054_s19, 0 }
  0x54   : > { %975 = dma.done.wait (%p1311_p11), [#allocation6], 1024   ;;  %p1312_p2 = pmov %p1311_p11 }
  0x55   : > { %v1002_v0 = vmov 0.0|0.0   ;;  %vm1003_vm0 = vmmov 0   ;;  %v1004_v1 = vmov 0.0   ;;  %v261_v2 = vld [vmem:[#allocation5] sm:$0xff]  ;;  %v262_v3 = vld [vmem:[#allocation5 + $0x8] sm:$0xff]  ;;  %v263_v4 = vld [vmem:[#allocation5 + $0x10] sm:$0xff]  ;;  %v342_v43 = vlaneseq }
  0x56   : > { %977 = vsyncadd (%p1312_p2), [#allocation6], 4294966272  ;;  %746 = vmatprep.subr.bf16.mxu0 %v1002_v0  ;;  %724 = vmatprep.mubr.msk.f32.mxu0 %vm1003_vm0, %v1004_v1  ;;  %vm239_vm1 = vcmask 523264   ;;  %v747_v5 = vpack.c.bf16 %v262_v3, %v261_v2  ;;  %v264_v6 = vld [vmem:[#allocation5 + $0x18] sm:$0xff]  ;;  %v231_v7 = vld [vmem:[%s1184_s29] sm:$0xff]  ;;  %s230_s9 = scalar_lea.vmem [#allocation7], %s668_s20 }
  0x57   : > { %758 = vmatprep.subr.bf16.mxu1 %v1002_v0  ;;  %743 = vmatprep.mubr.msk.f32.mxu1 %vm1003_vm0, %v1004_v1  ;;  %v750_v8 = vpack.c.bf16 %v264_v6, %v263_v4  ;;  %v232_v9 = vld [vmem:[%s1184_s29 + $0x8] sm:$0xff]  ;;  %v233_v10 = vld [vmem:[%s1184_s29 + $0x10] sm:$0xff]  ;;  %v234_v11 = vld [vmem:[%s1184_s29 + $0x18] sm:$0xff]  ;;  %v240_v12 = vsel %vm239_vm1, %v231_v7, 0.0  ;;  %v343_v44 = vshrl.u32 %v342_v43, 7  ;;  %s689_s28 = sshll.u32 %s1054_s19, 10 }
  0x58   : > { %748 = vmatpush3.bf16.msra.mxu0 %v747_v5  ;;  %760 = vmatpush3.bf16.msra.mxu1 %v747_v5  ;;  %v265_v13 = vld [vmem:[#allocation5 + $0x20] sm:$0xff]  ;;  %v266_v14 = vld [vmem:[#allocation5 + $0x28] sm:$0xff]  ;;  %v241_v15 = vsel %vm239_vm1, %v232_v9, 0.0  ;;  %v243_v16 = vsel %vm239_vm1, %v233_v10, 0.0  ;;  %v245_v19 = vsel %vm239_vm1, %v234_v11, 0.0  ;;  %v267_v23 = vld [vmem:[#allocation5 + $0x30] sm:$0xff]  ;;  %s1244_s19 = scalar_lea.hbm %s1298_s4, %s689_s28 }
  0x59   : > { %749 = vmatprep.subr.bf16.mxu0 %v1002_v0  ;;  %761 = vmatprep.subr.bf16.mxu1 %v1002_v0  ;;  %v235_v17 = vld [vmem:[%s1184_s29 + $0x20] sm:$0xff]  ;;  %v242_v18 = vadd.f32 %v241_v15, %v240_v12  ;;  %v753_v20 = vpack.c.bf16 %v266_v14, %v265_v13  ;;  %v236_v21 = vld [vmem:[%s1184_s29 + $0x28] sm:$0xff]  ;;  %v268_v24 = vld [vmem:[#allocation5 + $0x38] sm:$0xff]  ;;  %v344_v45 = vsub.s32 0, %v343_v44  ;;  %s577_s10 = sshll.u32 %s230_s9, 4  ;;  %s564_s26 = scalar_lea.sflag [#allocation4], %s1178_s11  ;;  %s1246_s10 = int_to_ptr.vmem [resolvable:$true] %s577_s10 }
  0x5a   : > { %v247_v25 = vsel %vm239_vm1, %v235_v17, 0.0  ;;  %v237_v26 = vld [vmem:[%s1184_s29 + $0x30] sm:$0xff]  ;;  %v249_v28 = vsel %vm239_vm1, %v236_v21, 0.0  ;;  %v756_v29 = vpack.c.bf16 %v268_v24, %v267_v23  ;;  %v238_v30 = vld [vmem:[%s1184_s29 + $0x38] sm:$0xff]  ;;  %s926_s8 = scalar_lea.vmem %s1246_s10, 1024  ;;  %s1005_s25 = smov [#allocation7]  }
  0x5b   : > { %v244_v22 = vadd.f32 %v243_v16, %v242_v18  ;;  %v251_v32 = vsel %vm239_vm1, %v237_v26, 0.0  ;;  %v253_v34 = vsel %vm239_vm1, %v238_v30, 0.0  ;;  %p927_p4 = scmp.ne.s32.totalorder %s1246_s10, %s926_s8  ;;  %s930_s14 = sshll.u32 %s1005_s25, 4  ;;  %s931_s14 = int_to_ptr.vmem [resolvable:$false] %s930_s14 }
  0x5c   : > { %751 = vmatpush3.bf16.msra.mxu0 %v750_v8  ;;  %763 = vmatpush3.bf16.msra.mxu1 %v750_v8  ;;  %s932_s20 = scalar_lea.vmem %s931_s14, 2048  ;;  %p933_p10 = scmp.lt.s32.totalorder %s1246_s10, %s931_s14 }
  0x5d   : > { %752 = vmatprep.subr.bf16.mxu0 %v1002_v0  ;;  %764 = vmatprep.subr.bf16.mxu1 %v1002_v0  ;;  %v246_v27 = vadd.f32 %v245_v19, %v244_v22  ;;  %p928_p6 = pnand %p927_p4, %p1127_p12  ;;  %p934_p13 = scmp.lt.s32.totalorder %s932_s20, %s926_s8 }
  0x5f   : > { %v248_v31 = vadd.f32 %v247_v25, %v246_v27  ;;  %v673_v27 = vld [vmem:[%s1295_s1] ss:$0 sm:$0xff]  ;;  %p929_p8 = pneg %p928_p6  ;;  %p935_p3 = por %p934_p13, %p933_p10 }
  0x60   : > { %754 = vmatpush3.bf16.msra.mxu0 %v753_v20  ;;  %766 = vmatpush3.bf16.msra.mxu1 %v753_v20 }
  0x61   : > { %755 = vmatprep.subr.bf16.mxu0 %v1002_v0  ;;  %767 = vmatprep.subr.bf16.mxu1 %v1002_v0  ;;  %v250_v33 = vadd.f32 %v249_v28, %v248_v31  ;;  %p936_p7 = pnand %p935_p3, %p929_p8 }
  0x63   : > { %v252_v35 = vadd.f32 %v251_v32, %v250_v33 }
  0x64   : > { %757 = vmatpush3.bf16.msra.mxu0 %v756_v29  ;;  %769 = vmatpush3.bf16.msra.mxu1 %v756_v29 }
  0x65   : > { %v254_v36 = vadd.f32 %v253_v34, %v252_v35 }
  0x67   : > { %v255_v37 = vrot.slane %v254_v36, 4 }
  0x69   : > { %v256_v38 = vadd.f32 %v255_v37, %v254_v36  ;;  %v674_v36 = vld [vmem:[%s1296_s2] ss:$0 sm:$0xff] }
  0x6b   : > { %v257_v39 = vrot.slane %v256_v38, 2 }
  0x6d   : > { %v258_v40 = vadd.f32 %v257_v39, %v256_v38 }
  0x6f   : > { %v259_v41 = vrot.slane %v258_v40, 1 }
  0x71   : > { %v260_v42 = vadd.f32 %v259_v41, %v258_v40 }
  0x73   : > { %725 = vmatmul.mubr.msk.f32.vlgmr.msra.gmra.mrb[0].mxu0 %vm239_vm1, %v260_v42 }
 0x146   : > { %v338_v46 = vpop.f32.mrb[0].mxu0 }
 0x147   : > { %v345_v47 = vrot.slane %v338_v46, %v344_v45  ;;  %v726_v48 = vpop.f32.mrb[1].mxu0 }
 0x149   : > { %v346_v49 = vsub.f32 %v231_v7, %v345_v47  ;;  %v347_v50 = vsub.f32 %v232_v9, %v345_v47  ;;  %v348_v51 = vsub.f32 %v233_v10, %v345_v47  ;;  %v349_v52 = vsub.f32 %v234_v11, %v345_v47 }
 0x14a   : > { %v350_v53 = vsub.f32 %v235_v17, %v345_v47  ;;  %v351_v57 = vsub.f32 %v236_v21, %v345_v47  ;;  %v352_v62 = vsub.f32 %v237_v26, %v345_v47  ;;  %v353_v2 = vsub.f32 %v238_v30, %v345_v47 }
 0x14b   : > { %v354_v54 = vmul.f32 %v346_v49, %v346_v49  ;;  %v355_v55 = vmul.f32 %v347_v50, %v347_v50  ;;  %v356_v56 = vmul.f32 %v348_v51, %v348_v51  ;;  %v357_v58 = vmul.f32 %v349_v52, %v349_v52 }
 0x14c   : > { %v358_v63 = vmul.f32 %v350_v53, %v350_v53  ;;  %v359_v3 = vmul.f32 %v351_v57, %v351_v57  ;;  %v360_v6 = vmul.f32 %v352_v62, %v352_v62  ;;  %v361_v9 = vmul.f32 %v353_v2, %v353_v2 }
 0x14d   : > { %v362_v59 = vsel %vm239_vm1, %v354_v54, 0.0  ;;  %v363_v60 = vsel %vm239_vm1, %v355_v55, 0.0  ;;  %v365_v0 = vsel %vm239_vm1, %v356_v56, 0.0  ;;  %v367_v4 = vsel %vm239_vm1, %v357_v58, 0.0 }
 0x14e   : > { %v364_v61 = vadd.f32 %v363_v60, %v362_v59  ;;  %v369_v7 = vsel %vm239_vm1, %v358_v63, 0.0  ;;  %v371_v10 = vsel %vm239_vm1, %v359_v3, 0.0  ;;  %v373_v12 = vsel %vm239_vm1, %v360_v6, 0.0 }
 0x14f   : > { %v375_v14 = vsel %vm239_vm1, %v361_v9, 0.0 }
 0x150   : > { %v366_v1 = vadd.f32 %v365_v0, %v364_v61 }
 0x152   : > { %v368_v5 = vadd.f32 %v367_v4, %v366_v1 }
 0x154   : > { %v370_v8 = vadd.f32 %v369_v7, %v368_v5 }
 0x156   : > { %v372_v11 = vadd.f32 %v371_v10, %v370_v8 }
 0x158   : > { %v374_v13 = vadd.f32 %v373_v12, %v372_v11 }
 0x15a   : > { %v376_v15 = vadd.f32 %v375_v14, %v374_v13 }
 0x15c   : > { %v377_v16 = vrot.slane %v376_v15, 4 }
 0x15e   : > { %v378_v17 = vadd.f32 %v377_v16, %v376_v15 }
 0x160   : > { %v379_v18 = vrot.slane %v378_v17, 2 }
 0x162   : > { %v380_v19 = vadd.f32 %v379_v18, %v378_v17 }
 0x164   : > { %v381_v20 = vrot.slane %v380_v19, 1 }
 0x166   : > { %v382_v21 = vadd.f32 %v381_v20, %v380_v19 }
 0x168   : > { %744 = vmatmul.mubr.msk.f32.vlgmr.msra.gmra.mrb[0].mxu1 %vm239_vm1, %v382_v21 }
 0x23b   : > { %v452_v22 = vpop.f32.mrb[0].mxu1 }
 0x23c   : > { %v453_v23 = vadd.f32 1e-05, %v452_v22  ;;  %v745_v24 = vpop.f32.mrb[1].mxu1 }
 0x23e   : > { %834 = vrsqrt.f32 %v453_v23 }
 0x248   : > { %v835_v25 = vpop.eup %834 }
 0x249   : > { %v460_v26 = vrot.slane %v835_v25, %v344_v45 }
 0x24b   : > { %v461_v28 = vmul.f32 %v460_v26, %v346_v49  ;;  %v462_v29 = vmul.f32 %v460_v26, %v347_v50  ;;  %v463_v30 = vmul.f32 %v460_v26, %v348_v51  ;;  %v464_v31 = vmul.f32 %v460_v26, %v349_v52 }
 0x24c   : > { %v465_v32 = vmul.f32 %v460_v26, %v350_v53  ;;  %v466_v33 = vmul.f32 %v460_v26, %v351_v57  ;;  %v467_v34 = vmul.f32 %v460_v26, %v352_v62  ;;  %v468_v35 = vmul.f32 %v460_v26, %v353_v2 }
 0x24d   : > { %v476_v37 = vmul.f32 %v673_v27, %v461_v28  ;;  %v477_v38 = vmul.f32 %v673_v27, %v462_v29  ;;  %v478_v39 = vmul.f32 %v673_v27, %v463_v30  ;;  %v479_v40 = vmul.f32 %v673_v27, %v464_v31 }
 0x24e   : > { %v480_v41 = vmul.f32 %v673_v27, %v465_v32  ;;  %v481_v42 = vmul.f32 %v673_v27, %v466_v33  ;;  %v482_v43 = vmul.f32 %v673_v27, %v467_v34  ;;  %v483_v44 = vmul.f32 %v673_v27, %v468_v35 }
 0x24f   : > { %v491_v45 = vadd.f32 %v674_v36, %v476_v37  ;;  %v492_v46 = vadd.f32 %v674_v36, %v477_v38  ;;  %v493_v47 = vadd.f32 %v674_v36, %v478_v39  ;;  %v494_v48 = vadd.f32 %v674_v36, %v479_v40 }
 0x250   : > { %v495_v49 = vadd.f32 %v674_v36, %v480_v41  ;;  %v496_v50 = vadd.f32 %v674_v36, %v481_v42  ;;  %v1226_v51 = vadd.f32 %v674_v36, %v482_v43  ;;  %v1228_v55 = vadd.f32 %v674_v36, %v483_v44 }
 0x251   : > { %v675_v52 = vmul.f32 -1.442695, %v491_v45  ;;  %v676_v53 = vmul.f32 -1.442695, %v492_v46  ;;  %v677_v54 = vmul.f32 -1.442695, %v493_v47 }
 0x252   : > { %v678_v56 = vmul.f32 -1.442695, %v494_v48  ;;  %v679_v57 = vmul.f32 -1.442695, %v495_v49  ;;  %v680_v58 = vmul.f32 -1.442695, %v496_v50 }
 0x253   : > { %836 = vpow2.f32 %v675_v52  ;;  %v681_v59 = vmul.f32 -1.442695, %v1226_v51  ;;  %v682_v60 = vmul.f32 -1.442695, %v1228_v55 }
 0x254   : > { %838 = vpow2.f32 %v676_v53 }
 0x255   : > { %840 = vpow2.f32 %v677_v54 }
 0x256   : > { %842 = vpow2.f32 %v678_v56 }
 0x257   : > { %844 = vpow2.f32 %v679_v57 }
 0x258   : > { %846 = vpow2.f32 %v680_v58 }
 0x259   : > { %848 = vpow2.f32 %v681_v59 }
 0x25a   : > { %850 = vpow2.f32 %v682_v60 }
 0x25d   : > { %v837_v61 = vpop.eup %836 }
 0x25e   : > { %v839_v62 = vpop.eup %838  ;;  %v523_v63 = vadd.f32 1.0, %v837_v61 }
 0x25f   : > { %v841_v0 = vpop.eup %840  ;;  %v524_v1 = vadd.f32 1.0, %v839_v62 }
 0x260   : > { %v843_v2 = vpop.eup %842  ;;  %v525_v3 = vadd.f32 1.0, %v841_v0  ;;  %852 = vrcp.f32 %v523_v63 }
 0x261   : > { %v845_v4 = vpop.eup %844  ;;  %v526_v5 = vadd.f32 1.0, %v843_v2  ;;  %854 = vrcp.f32 %v524_v1 }
 0x262   : > { %v847_v6 = vpop.eup %846  ;;  %v527_v7 = vadd.f32 1.0, %v845_v4  ;;  %856 = vrcp.f32 %v525_v3 }
 0x263   : > { %v849_v8 = vpop.eup %848  ;;  %v528_v9 = vadd.f32 1.0, %v847_v6  ;;  %858 = vrcp.f32 %v526_v5 }
 0x264   : > { %v851_v10 = vpop.eup %850  ;;  %v529_v11 = vadd.f32 1.0, %v849_v8  ;;  %860 = vrcp.f32 %v527_v7 }
 0x265   : > { %v530_v12 = vadd.f32 1.0, %v851_v10  ;;  %862 = vrcp.f32 %v528_v9 }
 0x266   : > { %864 = vrcp.f32 %v529_v11 }
 0x267   : > { %866 = vrcp.f32 %v530_v12 }
 0x26a   : > { %v853_v13 = vpop.eup %852 }
 0x26b   : > { %v855_v14 = vpop.eup %854  ;;  %v547_v15 = vmul.f32 %v853_v13, %v491_v45 }
 0x26c   : > { %v857_v16 = vpop.eup %856  ;;  %v548_v17 = vmul.f32 %v855_v14, %v492_v46 }
 0x26d   : > { %v859_v18 = vpop.eup %858  ;;  %v549_v19 = vmul.f32 %v857_v16, %v493_v47  ;;  %555 = vst.msk [vmem:[%s230_s9] sm:$0xff] %vm239_vm1, %v547_v15 }
 0x26e   : > { %v861_v20 = vpop.eup %860  ;;  %v550_v21 = vmul.f32 %v859_v18, %v494_v48  ;;  %556 = vst.msk [vmem:[%s230_s9 + $0x8] sm:$0xff] %vm239_vm1, %v548_v17 }
 0x26f   : > { %v863_v22 = vpop.eup %862  ;;  %v551_v23 = vmul.f32 %v861_v20, %v495_v49  ;;  %557 = vst.msk [vmem:[%s230_s9 + $0x10] sm:$0xff] %vm239_vm1, %v549_v19 }
 0x270   : > { %v865_v24 = vpop.eup %864  ;;  %v552_v25 = vmul.f32 %v863_v22, %v496_v50  ;;  %558 = vst.msk [vmem:[%s230_s9 + $0x18] sm:$0xff] %vm239_vm1, %v550_v21 }
 0x271   : > { %v867_v26 = vpop.eup %866  ;;  %v553_v27 = vmul.f32 %v865_v24, %v1226_v51  ;;  %559 = vst.msk [vmem:[%s230_s9 + $0x20] sm:$0xff] %vm239_vm1, %v551_v23 }
 0x272   : > { %v554_v28 = vmul.f32 %v867_v26, %v1228_v55  ;;  %560 = vst.msk [vmem:[%s230_s9 + $0x28] sm:$0xff] %vm239_vm1, %v552_v25 }
 0x273   : > { %561 = vst.msk [vmem:[%s230_s9 + $0x30] sm:$0xff] %vm239_vm1, %v553_v27 }
 0x274   : > { %562 = vst.msk [vmem:[%s230_s9 + $0x38] sm:$0xff] %vm239_vm1, %v554_v28 }
 0x275   : > { %939 = shalt.err (!%p936_p7)
}
 0x276   : > { %s940_s5 = scalar_lea.hbm %s1244_s19, 1024  ;;  %s944_s23 = scalar_lea.hbm %s1298_s4, 2048 }
 0x277   : > { %p941_p9 = scmp.ne.s32.totalorder %s1244_s19, %s940_s5  ;;  %p945_p5 = scmp.lt.u32.totalorder %s1244_s19, %s1298_s4 }
 0x278   : > { %p946_p11 = scmp.lt.u32.totalorder %s944_s23, %s940_s5  ;;  %p948_p4 = scmp.lt.u32.totalorder %s940_s5, %s1244_s19 }
 0x279   : > { %p942_p1 = pnand %p941_p9, %p1127_p12 }
 0x27a   : > { %p947_p2 = por %p946_p11, %p945_p5 }
 0x27b   : > { %p943_p0 = pneg %p942_p1 }
 0x27c   : > { %p949_p6 = por %p948_p4, %p947_p2 }
 0x27e   : > { %p950_p8 = pnand %p949_p6, %p943_p0 }
 0x280   : > { %953 = shalt.err (!%p950_p8)
}
 0x281   : > { %s1006_s9 = smov 128   ;;  %s1007_s28 = smov 8  }
 0x282   : > { %776 = dma.vmem_to_hbm [thread:$0]  (%p1127_p12), %s1246_s10, 1024, %s1244_s19, %s564_s26, %s1006_s9, %s1006_s9, %s1007_s28  }
 0x283 PF: > { %s592_s6 = sand.u32 1, %s984_s15   ;;  %p1313_p10 = scmp.ne.s32.totalorder %s1303_s22, 0 }
 0x284   : > { %p1314_p13 = scmp.ge.s32.totalorder %s996_s18, 2  ;;  %s593_s7 = scalar_lea.sflag [#allocation4], %s592_s6 }
 0x286   : > { %p787_p3 = pnand %p1314_p13, %p1313_p10 }
 0x288   : > { %979 = dma.done.wait (!%p787_p3), %s593_s7, 1024  }
 0x289   : > { %981 = vsyncadd (!%p787_p3), %s593_s7, 4294966272  ;;  %p18_p7 = scmp.ge.s32.totalorder %s1089_s27, 4   ;;  %s1315_s15 = smov %s988_s16 }
 0x28a   : > { %s1316_s16 = smov %s992_s17  ;;  %s1317_s17 = smov %s1123_s24 }
 0x28b   : > { %s1318_s18 = smov %s1089_s27  ;;  %20 = sbr.rel (!%p18_p7) target bundleno = 6 (0x6), region = 85 }
 0x292   :  { %598 = vsyncpa [#allocation3], 1 }
 0x293   :  { %600 = vsyncpa [#allocation3 + $0x1], 1 }
 0x294   :  { %601 = vsyncpa [#allocation6], 1 }
 0x295   :  { %602 = vsyncpa [#allocation4], 1 }
 0x296   :  { %604 = vsyncpa [#allocation4 + $0x1], 1 }

</bundles_post_ra>
